<compile_context>
chip_gen: v7x
topology: tpu7x:2x2x1
jax: 0.10.0
libtpu: 0.0.40
codegen_flags: <defaults>
</compile_context>

<pallas_src>
import jax
import jax.numpy as jnp
from jax.experimental import pallas as pl
from jax.experimental.pallas import tpu as pltpu


# --------------------------------------------------------------------------- #
# Kernels
# --------------------------------------------------------------------------- #
def _accumulate(x_ref, w_ref, a_ref, bias_ref, acc_ref):
    """One (batch-tile bi, Cout-tile j, Cin-tile r, anchor k) grid step."""
    r = pl.program_id(2)   # Cin-tile axis (reduction; usually size 1)
    k = pl.program_id(3)   # anchor axis   (reduction)

    # Initialize the resident accumulator with the precomputed alpha @ b bias
    # contribution (folds the bias in for free; no per-anchor bias in the loop).
    @pl.when(jnp.logical_and(r == 0, k == 0))
    def _init():
        acc_ref[...] = bias_ref[...].astype(acc_ref.dtype)

    w = w_ref[0]                               # (tn, tk): anchor-k weight tile
    alpha_k = a_ref[k].astype(jnp.float32)     # (tb, 1):  alpha[:, k] column

    # x_tile @ W_tile^T without materializing a transpose: contract the last
    # dims of both operands on the MXU with an f32 accumulator (NT form, same
    # as jnp.einsum('bqd,bkd->bqk', ...) in the reference flash kernels).
    partial = jax.lax.dot_general(
        x_ref[...], w,
        dimension_numbers=(((1,), (1,)), ((), ())),
        preferred_element_type=jnp.float32)    # (tb, tn)

    acc_ref[...] += (alpha_k * partial).astype(acc_ref.dtype)


def _kernel_direct(x_ref, w_ref, a_ref, bias_ref, o_ref):
    # f32 output: accumulate straight into the resident output block
    # (no scratch, no final copy-out).
    _accumulate(x_ref, w_ref, a_ref, bias_ref, o_ref)


def _kernel_scratch(x_ref, w_ref, a_ref, bias_ref, o_ref, acc_ref):
    _accumulate(x_ref, w_ref, a_ref, bias_ref, acc_ref)
    is_last = jnp.logical_and(pl.program_id(2) == pl.num_programs(2) - 1,
                              pl.program_id(3) == pl.num_programs(3) - 1)

    @pl.when(is_last)
    def _store():
        o_ref[...] = acc_ref[...].astype(o_ref.dtype)


# --------------------------------------------------------------------------- #
# Wrapper
# --------------------------------------------------------------------------- #
def _round_up(x, m):
    return -(-x // m) * m


def _round_down(x, m):
    return max(m, (x // m) * m)


_W_TILE_BYTES = 4 * 1024 * 1024   # target per W tile (~8 MiB double-buffered)


def _pick_tiles(cin, cout, w_itemsize):
    cin128 = _round_up(cin, 128)
    cout128 = _round_up(cout, 128)

    if cin128 * 128 * w_itemsize <= _W_TILE_BYTES:
        # Full-Cin tile: collapses the Cin reduction axis -> one contiguous
        # DMA per W tile, x fetched once per batch tile.
        tk = cin128
    else:
        # Very large Cin: keep the contraction tile large (rare path).
        # TODO(synk): for this path a tile-contiguous W pre-layout
        # [K, Cout/tn, tn, Cin] would make each W-tile DMA one burst.
        tk = min(_round_down(_W_TILE_BYTES // (128 * w_itemsize), 128), 2048)

    tn = min(cout128, _round_down(_W_TILE_BYTES // (tk * w_itemsize), 128))

    # v7x megacore: keep >= 2 tiles on the parallel Cout axis when possible
    # (one tile would leave a TensorCore idle); harmless on v5e/v6e.
    if cout128 >= 256:
        tn = min(tn, _round_down(cout128 // 2, 128))

    return tn, tk


def linear_subspace_forward(x, alpha, W, b=None):
    """LinearSubspace forward.

    x: [B, Cin]; alpha: [B, K]; W: [K, Cout, Cin] (stacked nn.Linear weights;
    pass bf16 to halve the dominant HBM stream); b: [K, Cout] or None.
    Returns [B, Cout] in x.dtype (accumulation is always f32).
    """
    B, Cin = x.shape
    K, Cout, Cin_w = W.shape
    assert Cin_w == Cin and alpha.shape == (B, K)

    x_item = jnp.dtype(x.dtype).itemsize
    w_item = jnp.dtype(W.dtype).itemsize
    out_dtype = x.dtype
    out_item = jnp.dtype(out_dtype).itemsize

    # dtype-aware sublane multiple (8 f32 / 16 bf16 / 32 int8) so Mosaic does
    # not relayout the batch dimension.
    sub = max(8, 32 // x_item)

    tn, tk = _pick_tiles(Cin, Cout, w_item)

    B_p = _round_up(B, sub)
    tb = B_p if B_p <= 512 else 512           # batch tile (parallel axis)
    B_p = _round_up(B_p, tb)
    Cout_p = _round_up(Cout, tn)              # pad-to-tile (keeps tiles large)
    Cin_p = _round_up(Cin, tk)

    # ---- wrapper-side prep (all exact: zero padding, sliced off at the end) --
    if (B_p, Cin_p) != (B, Cin):
        x = jnp.pad(x, ((0, B_p - B), (0, Cin_p - Cin)))
    if (Cout_p, Cin_p) != (Cout, Cin):
        W = jnp.pad(W, ((0, 0), (0, Cout_p - Cout), (0, Cin_p - Cin)))

    # alpha as one VMEM-resident (K, B_p, 1) block (constant index map).
    a_f32 = alpha.astype(jnp.float32)
    a3 = jnp.pad(a_f32, ((0, B_p - B), (0, 0))).T.reshape(K, B_p, 1)

    # Fold the bias up front: bias_contrib = alpha @ b (negligible O(B*K*Cout)).
    if b is None:
        bias_c = jnp.zeros((B_p, Cout_p), jnp.float32)
    else:
        bias_c = jnp.dot(a_f32, b.astype(jnp.float32))               # [B, Cout]
        bias_c = jnp.pad(bias_c, ((0, B_p - B), (0, Cout_p - Cout)))

    grid = (B_p // tb, Cout_p // tn, Cin_p // tk, K)

    in_specs = [
        pl.BlockSpec((tb, tk), lambda bi, j, r, k: (bi, r)),         # x tile
        pl.BlockSpec((1, tn, tk), lambda bi, j, r, k: (k, j, r)),    # W_k tile
        pl.BlockSpec((K, tb, 1), lambda bi, j, r, k: (0, bi, 0)),    # alpha (resident)
        pl.BlockSpec((tb, tn), lambda bi, j, r, k: (bi, j)),         # alpha @ b
    ]
    out_spec = pl.BlockSpec((tb, tn), lambda bi, j, r, k: (bi, j))   # resident acc.

    direct = out_dtype == jnp.float32
    kernel = _kernel_direct if direct else _kernel_scratch
    scratch = [] if direct else [pltpu.VMEM((tb, tn), jnp.float32)]

    # Double-buffered footprint -> raise the scoped-VMEM limit (v5e default is
    # only 16 MiB) while staying well inside v7x's 64 MiB physical VMEM.
    vmem_need = (2 * (tn * tk * w_item + tb * tk * x_item
                      + tb * tn * 4 + K * tb * 4)
                 + 2 * tb * tn * out_item
                 + (0 if direct else tb * tn * 4))
    vmem_limit = int(min(max(int(vmem_need * 1.5) + (2 << 20), 24 << 20),
                         60 << 20))

    cost = pl.CostEstimate(
        flops=2 * B_p * Cin_p * Cout_p * K + 2 * B_p * Cout_p * K,
        transcendentals=0,
        bytes_accessed=(K * Cout_p * Cin_p * w_item        # weights (dominant)
                        + B_p * Cin_p * x_item             # activations
                        + B_p * Cout_p * (4 + out_item)    # bias_contrib + out
                        + K * B_p * 4),                    # alpha
    )

    out_p = pl.pallas_call(
        kernel,
        out_shape=jax.ShapeDtypeStruct((B_p, Cout_p), out_dtype),
        grid_spec=pltpu.PrefetchScalarGridSpec(
            num_scalar_prefetch=0,
            grid=grid,
            in_specs=in_specs,
            out_specs=out_spec,
            scratch_shapes=scratch,
        ),
        compiler_params=pltpu.CompilerParams(
            dimension_semantics=("parallel", "parallel", "arbitrary", "arbitrary"),
            vmem_limit_bytes=vmem_limit),
        cost_estimate=cost,
    )(x, W, a3, bias_c)

    return out_p[:B, :Cout]


# --------------------------------------------------------------------------- #
# Reference & self-test
# --------------------------------------------------------------------------- #
def _reference(x, alpha, W, b):
    xs = jnp.einsum("bi,koi->bko",
                    x.astype(jnp.float32), W.astype(jnp.float32))
    if b is not None:
        xs = xs + b.astype(jnp.float32)[None, :, :]
    return jnp.einsum("bko,bk->bo", xs, alpha.astype(jnp.float32))


if __name__ == "__main__":
    def make_case(key, B, Cin, Cout, K, dtype=jnp.float32):
        kx, ka, kw, kb = jax.random.split(key, 4)
        x = jax.random.normal(kx, (B, Cin)).astype(dtype)
        alpha = jax.nn.softmax(jax.random.normal(ka, (B, K)), axis=-1)
        bound = 1.0 / (Cin ** 0.5)
        W = jax.random.uniform(kw, (K, Cout, Cin),
                               minval=-bound, maxval=bound).astype(dtype)
        b = jax.random.uniform(kb, (K, Cout), minval=-bound, maxval=bound)
        return x, alpha, W, b

    k1, k2, k3 = jax.random.split(jax.random.PRNGKey(0), 3)

    # Aligned f32 case: full-Cin tile, direct accumulate-in-output path,
    # two parallel Cout tiles.
    x, alpha, W, b = make_case(k1, B=8, Cin=256, Cout=256, K=4)
    out = jax.block_until_ready(linear_subspace_forward(x, alpha, W, b))
    ref = _reference(x, alpha, W, b)
    assert out.shape == ref.shape
    assert jnp.allclose(out, ref, atol=1e-4, rtol=1e-4), "aligned f32 mismatch"

    # Unaligned case: exercises dtype-aware batch padding and pad-to-tile.
    x, alpha, W, b = make_case(k2, B=5, Cin=48, Cout=72, K=3)
    out = jax.block_until_ready(linear_subspace_forward(x, alpha, W, b))
    ref = _reference(x, alpha, W, b)
    assert out.shape == ref.shape
    assert jnp.allclose(out, ref, atol=1e-4, rtol=1e-4), "unaligned f32 mismatch"

    # bf16 weights/activations: halved HBM stream, f32-scratch accumulator path.
    x, alpha, W, b = make_case(k3, B=6, Cin=128, Cout=384, K=2,
                               dtype=jnp.bfloat16)
    out = jax.block_until_ready(linear_subspace_forward(x, alpha, W, b))
    ref = _reference(x, alpha, W, b)
    assert out.dtype == jnp.bfloat16 and out.shape == ref.shape
    assert jnp.allclose(out.astype(jnp.float32), ref, atol=5e-2, rtol=5e-2), \
        "bf16 mismatch"

    print("KERNEL_OK")
</pallas_src>

<mosaic_0001>
module attributes {stable_mosaic.version = 11 : i64} {
  func.func @_kernel_direct(%arg0: i32, %arg1: i32, %arg2: i32, %arg3: i32, %arg4: memref<8x256xf32, #tpu.memory_space<vmem>>, %arg5: memref<1x128x256xf32, #tpu.memory_space<vmem>>, %arg6: memref<4x8x1xf32, #tpu.memory_space<vmem>>, %arg7: memref<8x128xf32, #tpu.memory_space<vmem>>, %arg8: memref<8x128xf32, #tpu.memory_space<vmem>>) attributes {dimension_semantics = [#tpu.dimension_semantics<parallel>, #tpu.dimension_semantics<parallel>, #tpu.dimension_semantics<arbitrary>, #tpu.dimension_semantics<arbitrary>], iteration_bounds = array<i64: 1, 2, 1, 4>, scalar_prefetch = 0 : i64, scratch_operands = 0 : i64, tpu.core_type = #tpu.core_type<tc>, window_params = [{transform_indices = @transform_0, window_bounds = array<i64: 8, 256>}, {transform_indices = @transform_1, window_bounds = array<i64: 1, 128, 256>}, {transform_indices = @transform_2, window_bounds = array<i64: 4, 8, 1>}, {transform_indices = @transform_3, window_bounds = array<i64: 8, 128>}, {transform_indices = @transform_4, window_bounds = array<i64: 8, 128>}]} {
    %c0_i32 = arith.constant 0 : i32
    %0 = arith.cmpi eq, %arg2, %c0_i32 : i32
    %c0_i32_0 = arith.constant 0 : i32
    %1 = arith.cmpi eq, %arg3, %c0_i32_0 : i32
    %2 = arith.andi %0, %1 : i1
    %3 = arith.extui %2 : i1 to i32
    %c0_i32_1 = arith.constant 0 : i32
    %4 = arith.cmpi ne, %3, %c0_i32_1 : i32
    scf.if %4 {
      %c0_12 = arith.constant 0 : index
      %c0_13 = arith.constant 0 : index
      %17 = vector.load %arg7[%c0_12, %c0_13] : memref<8x128xf32, #tpu.memory_space<vmem>>, vector<8x128xf32>
      %c0_14 = arith.constant 0 : index
      %c0_15 = arith.constant 0 : index
      %18 = vector.load %arg8[%c0_14, %c0_15] : memref<8x128xf32, #tpu.memory_space<vmem>>, vector<8x128xf32>
      tpu.vector_store %arg8[%c0_14, %c0_15], %17 {strides = array<i32>} : memref<8x128xf32, #tpu.memory_space<vmem>>, vector<8x128xf32>,
    } else {
    }
    %c0 = arith.constant 0 : index
    %c0_2 = arith.constant 0 : index
    %c0_3 = arith.constant 0 : index
    %5 = vector.load %arg5[%c0, %c0_2, %c0_3] : memref<1x128x256xf32, #tpu.memory_space<vmem>>, vector<1x128x256xf32>
    %6 = vector.shape_cast %5 : vector<1x128x256xf32> to vector<128x256xf32>
    %7 = arith.index_cast %arg3 : i32 to index
    %c0_4 = arith.constant 0 : index
    %c0_5 = arith.constant 0 : index
    %8 = vector.load %arg6[%7, %c0_4, %c0_5] : memref<4x8x1xf32, #tpu.memory_space<vmem>>, vector<1x8x1xf32>
    %9 = vector.shape_cast %8 : vector<1x8x1xf32> to vector<8x1xf32>
    %c0_6 = arith.constant 0 : index
    %c0_7 = arith.constant 0 : index
    %10 = vector.load %arg4[%c0_6, %c0_7] : memref<8x256xf32, #tpu.memory_space<vmem>>, vector<8x256xf32>
    %cst = arith.constant dense<0.000000e+00> : vector<8x128xf32>
    %11 = tpu.matmul %10, %6, %cst {dimension_numbers = #tpu.dot_dimension_numbers<[1], [1], [0], [0], [0, 0, 1, 0], [], []>} : vector<8x256xf32>, vector<128x256xf32>, vector<8x128xf32> -> vector<8x128xf32>
    %c0_8 = arith.constant 0 : index
    %c0_9 = arith.constant 0 : index
    %12 = vector.load %arg8[%c0_8, %c0_9] : memref<8x128xf32, #tpu.memory_space<vmem>>, vector<8x128xf32>
    %13 = vector.broadcast %9 : vector<8x1xf32> to vector<8x128xf32>
    %14 = arith.mulf %13, %11 : vector<8x128xf32>
    %15 = arith.addf %12, %14 : vector<8x128xf32>
    %c0_10 = arith.constant 0 : index
    %c0_11 = arith.constant 0 : index
    %16 = vector.load %arg8[%c0_10, %c0_11] : memref<8x128xf32, #tpu.memory_space<vmem>>, vector<8x128xf32>
    tpu.vector_store %arg8[%c0_10, %c0_11], %15 {strides = array<i32>} : memref<8x128xf32, #tpu.memory_space<vmem>>, vector<8x128xf32>,
    return
  }
  func.func @transform_0(%arg0: i32, %arg1: i32, %arg2: i32, %arg3: i32) -> (i32, i32) {
    %c0_i32 = arith.constant 0 : i32
    return %arg0, %arg2 : i32, i32
  }
  func.func @transform_1(%arg0: i32, %arg1: i32, %arg2: i32, %arg3: i32) -> (i32, i32, i32) {
    %c0_i32 = arith.constant 0 : i32
    return %arg3, %arg1, %arg2 : i32, i32, i32
  }
  func.func @transform_2(%arg0: i32, %arg1: i32, %arg2: i32, %arg3: i32) -> (i32, i32, i32) {
    %c0_i32 = arith.constant 0 : i32
    %c0_i32_0 = arith.constant 0 : i32
    %c0_i32_1 = arith.constant 0 : i32
    return %c0_i32, %arg0, %c0_i32_0 : i32, i32, i32
  }
  func.func @transform_3(%arg0: i32, %arg1: i32, %arg2: i32, %arg3: i32) -> (i32, i32) {
    %c0_i32 = arith.constant 0 : i32
    return %arg0, %arg1 : i32, i32
  }
  func.func @transform_4(%arg0: i32, %arg1: i32, %arg2: i32, %arg3: i32) -> (i32, i32) {
    %c0_i32 = arith.constant 0 : i32
    return %arg0, %arg1 : i32, i32
  }
}

</mosaic_0001>

<bundles_post_ra>
// kernel: tpu_custom_call.1
= control target key start
LH: loop header
LB: loop body
LE: loop exit
PB: predicated region body
PF: predicated region fallthrough
CT: control target
= control target key end

     0   :  { %9 = vsyncpa [#allocation3], 0  ;;  %s1251_s0 = inlined_call_operand.vmem [shape: f32[8,256], index: 0, kind: input, shape index: {}]   ;;  %s1252_s1 = inlined_call_operand.hbm [shape: f32[4,256,256], index: 1, kind: input, shape index: {}]   ;;  %s1253_s2 = inlined_call_operand.vmem [shape: f32[4,8,1], index: 2, kind: input, shape index: {}]   ;;  %s1254_s3 = inlined_call_operand.vmem [shape: f32[8,256], index: 3, kind: input, shape index: {}]   ;;  %s1255_s4 = inlined_call_operand.hbm [shape: f32[8,256], index: 4, kind: output, shape index: {}]  }
   0x1   :  { %11 = vsyncpa [#allocation3 + $0x1], 0 }
   0x2   :  { %12 = vsyncpa [#allocation4], 0 }
   0x3   :  { %14 = vsyncpa [#allocation4 + $0x1], 0  ;;  %s974_s15 = smov 0   ;;  %s976_s16 = smov 0  }
   0x4   :  { %s978_s17 = smov 0   ;;  %s980_s18 = smov 0  }
   0x5   :  { %s982_s19 = smov 0   ;;  %s984_s20 = smov 0  }
   0x6   :  { %s986_s21 = smov 0   ;;  %s988_s22 = smov 0  }
   0x7   :  { %s990_s23 = smov 0   ;;  %s992_s24 = smov 0  }
   0x8   :  { %s994_s25 = smov 0  }
   0x9 LB: > { %1260 = sst [smem:[#allocation8_spill]] %s922_s20  ;;  %s629_s26 = sadd.s32 4294967295, %s942_s25   ;;  %s942_s25 = sphi %s994_s25, %s20_s25   ;;  %s938_s24 = sphi %s992_s24, %s1283_s24   ;;  %s934_s23 = sphi %s990_s23, %s1282_s23   ;;  %s930_s22 = sphi %s988_s22, %s1281_s22   ;;  %s926_s21 = sphi %s986_s21, %s1280_s21   ;;  %s922_s20 = sphi %s984_s20, %s1272_s20   ;;  %s918_s19 = sphi %s982_s19, %s1279_s19   ;;  %s914_s18 = sphi %s980_s18, %s1278_s18   ;;  %s910_s17 = sphi %s978_s17, %s1277_s17   ;;  %s906_s16 = sphi %s976_s16, %s1276_s16   ;;  %s902_s15 = sphi %s974_s15, %s1275_s15  }
   0xa   : > { %s630_s27 = sadd.s32 4294967294, %s942_s25   ;;  %s35_s28 = sadd.s32 1, %s934_s23 }
   0xb   : > { %s42_s29 = sadd.s32 1, %s938_s24  ;;  %p36_p0 = scmp.ge.s32.totalorder %s35_s28, 4 }
   0xc   : > { %s85_s30 = sadd.s32 1, %s922_s20  ;;  %p92_p1 = scmp.ne.s32.totalorder %s922_s20, %s918_s19 }
   0xd   : > { %p93_p2 = scmp.eq.s32.totalorder %s942_s25, 0  ;;  %s1285_s28 = smov (%p36_p0, %s35_s28), 0 }
   0xe   : > { %1261 = sst [smem:[#allocation9_spill]] %s1285_s28  ;;  %s1287_s29 = smov (!%p36_p0, %s42_s29), %s938_s24 }
   0xf   : > { %s78_s5 = ssub.s32 %s934_s23, %s1285_s28  ;;  %p1040_p3 = por %p93_p2, %p92_p1 }
  0x10   : > { %p44_p4 = scmp.ge.s32.totalorder %s1287_s29, 2  ;;  %p98_p5 = scmp.ne.s32.totalorder %s918_s19, %s914_s18 }
  0x11   : > { %p99_p6 = scmp.eq.s32.totalorder %s629_s26, 0  ;;  %s167_s7 = sadd.s32 1, %s910_s17 }
  0x12   : > { %s1289_s29 = smov (%p44_p4, %s1287_s29), 0  ;;  %p177_p8 = scmp.ne.s32.totalorder %s910_s17, %s906_s16 }
  0x13   : > { %1263 = sst [smem:[#allocation10_spill]] %s1289_s29  ;;  %p1048_p7 = por %p99_p6, %p98_p5 }
  0x14   : > { %s79_s9 = ssub.s32 %s938_s24, %s1289_s29  ;;  %p178_p9 = scmp.eq.s32.totalorder %s629_s26, 7 }
  0x15   : > { %s80_s10 = sor.u32 %s79_s9, %s78_s5  ;;  %p165_p10 = scmp.eq.s32.totalorder %s79_s9, 0 }
  0x16   : > { %p83_p11 = scmp.eq.s32.totalorder %s80_s10, 0  ;;  %p1056_p12 = por %p178_p9, %p177_p8 }
  0x17   : > { %s1061_s12 = scalar_select %p165_p10, %s910_s17, %s167_s7  }
  0x18   : > { %s1265_s11 = scalar_select %p1056_p12, 1, 0 }
  0x19   : > { %s1064_s13 = scalar_select %p83_p11, %s922_s20, %s85_s30  }
  0x1a   : > { %p183_p13 = scmp.ne.s32.totalorder %s906_s16, %s902_s15  ;;  %p184_p0 = scmp.eq.s32.totalorder %s630_s27, 7 }
  0x1b   : > { %1266 = sst [smem:[#allocation11_spill]] %s1064_s13  ;;  %p696_p1 = scmp.lt.s32.totalorder %s942_s25, 8 }
  0x1c   : > { %p1069_p2 = por %p184_p0, %p183_p13  ;;  %s224_s18 = sand.u32 1, %s922_s20  }
  0x1d   : > { %s635_s26 = sshll.u32 %s224_s18, 8  ;;  %s650_s5 = sshll.u32 %s938_s24, 5 }
  0x1e   : > { %s1267_s14 = scalar_select %p1069_p2, 1, 0 }
  0x1f   : > { %s638_s9 = sshll.u32 %s934_s23, 6  ;;  %s228_s10 = scalar_lea.vmem [#allocation2], %s635_s26 }
  0x20   : > { %s240_s29 = sshll.u32 %s228_s10, 4  ;;  %s237_s28 = sadd.s32 %s650_s5, %s638_s9  ;;  %s1076_s29 = int_to_ptr.vmem [resolvable:$true] %s240_s29 }
  0x21   : > { %s639_s7 = sshll.u32 %s237_s28, 7  ;;  %p1080_p4 = pnand %p696_p1, %p1040_p3 }
  0x22   : > { %s1087_s20 = scalar_lea.hbm %s1252_s1, %s639_s7  ;;  %s1089_s26 = scalar_lea.sflag [#allocation3], %s224_s18 }
  0x23   : > { %s790_s5 = scalar_lea.hbm %s1087_s20, 4096  ;;  %p792_p3 = pneg %p1080_p4 }
  0x24   : > { %p791_p5 = scmp.ne.s32.totalorder %s1087_s20, %s790_s5  ;;  %s795_s13 = scalar_lea.hbm %s1252_s1, 32768 }
  0x25   : > { %p796_p9 = scmp.lt.u32.totalorder %s1087_s20, %s1252_s1  ;;  %p797_p10 = scmp.lt.u32.totalorder %s795_s13, %s790_s5 }
  0x26   : > { %p793_p6 = pnand %p792_p3, %p791_p5  ;;  %p799_p13 = scmp.lt.u32.totalorder %s790_s5, %s1087_s20 }
  0x27   : > { %p798_p11 = por %p797_p10, %p796_p9 }
  0x28   : > { %p794_p8 = pneg %p793_p6 }
  0x29   : > { %p800_p0 = por %p799_p13, %p798_p11 }
  0x2b   : > { %p801_p1 = pnand %p800_p0, %p794_p8 }
  0x2d   : > { %804 = shalt.err (!%p801_p1)
}
  0x2e   : > { %s805_s18 = scalar_lea.vmem %s1076_s29, 4096  ;;  %s944_s7 = smov [#allocation2]  }
  0x2f   : > { %p806_p5 = scmp.ne.s32.totalorder %s1076_s29, %s805_s18  ;;  %s810_s27 = sshll.u32 %s944_s7, 4  ;;  %s811_s27 = int_to_ptr.vmem [resolvable:$false] %s810_s27 }
  0x30   : > { %s812_s28 = scalar_lea.vmem %s811_s27, 8192  ;;  %p813_p12 = scmp.lt.s32.totalorder %s1076_s29, %s811_s27 }
  0x31   : > { %p808_p6 = pnand %p806_p5, %p792_p3  ;;  %p814_p9 = scmp.lt.s32.totalorder %s812_s28, %s805_s18 }
  0x33   : > { %p809_p2 = pneg %p808_p6  ;;  %p815_p10 = por %p814_p9, %p813_p12 }
  0x35   : > { %p816_p11 = pnand %p815_p10, %p809_p2 }
  0x37   : > { %819 = shalt.err (!%p816_p11)
}
  0x38   : > { %s945_s5 = smov 256   ;;  %s946_s6 = smov 16  }
  0x39   : > { %691 = dma.hbm_to_vmem [thread:$0]  (!%p1080_p4), %s1087_s20, 4096, %s1076_s29, %s1089_s26, %s945_s5, %s945_s5, %s946_s6  }
  0x3a   : > { %p640_p3 = scmp.ge.s32.totalorder %s942_s25, 1  ;;  %p259_p8 = scmp.lt.s32.totalorder %s942_s25, 9 }
  0x3c   : > { %p260_p13 = pnand %p640_p3, %p259_p8 }
  0x3d   : > { %s265_s13 = sand.u32 (!%p260_p13), 1, %s918_s19  }
  0x3e   : > { %263 = sbr.rel (%p260_p13) target bundleno = 377 (0x179), region = 36  ;;  %s641_s9 = sshll.u32 (!%p260_p13), %s265_s13, 8 }
  0x3f   : > { %s266_s10 = scalar_lea.sflag (!%p260_p13), [#allocation3], %s265_s13  ;;  %s1120_s18 = scalar_lea.vmem (!%p260_p13), [#allocation2], %s641_s9 }
  0x45   : > { %893 = dma.done.wait (%p1048_p7), %s266_s10, 4096  }
  0x46   : > { %895 = vsyncadd (%p1048_p7), %s266_s10, 4294963200  ;;  %s312_s20 = sand.u32 1, %s906_s16   ;;  %p333_p12 = scmp.lt.s32.totalorder %s930_s22, 1 }
  0x47   : > { %s642_s29 = sshll.u32 %s312_s20, 3  ;;  %p340_p2 = scmp.eq.s32.totalorder %s926_s21, 0 }
  0x48   : > { %s334_s30 = scalar_select %p333_p12, %s930_s22, 1 }
  0x49   : > { %s1135_s5 = scalar_lea.vmem [#allocation5], %s642_s29  ;;  %344 = sbr.rel (!%p340_p2) target bundleno = 80 (0x50), region = 44 }
  0x4a   : > { %s643_s26 = sshll.u32 %s334_s30, 3 }
  0x4b   : > { %s338_s28 = scalar_lea.vmem %s1254_s3, %s643_s26 }
  0x4c   : > { %v345_v0 = vld [vmem:[%s338_s28] sm:$0xff] (%p340_p2) }
  0x4d   : > { %346 = vst [vmem:[%s1135_s5] sm:$0xff] (%p340_p2), %v345_v0 }
  0x50 PF: > { %v348_v1 = vld [vmem:[%s1120_s18 + $0x8] sm:$0xff]  ;;  %v350_v2 = vld [vmem:[%s1120_s18 + $0x18] sm:$0xff]  ;;  %v347_v3 = vld [vmem:[%s1120_s18] sm:$0xff]  ;;  %v947_v8 = vmov 0   ;;  %s645_s8 = sshll.u32 %s926_s21, 3  ;;  %s647_s26 = sshll.u32 %s930_s22, 7 }
  0x51   : > { %v652_v4 = vpack.c.bf16 %v350_v2, %v348_v1  ;;  %v349_v5 = vld [vmem:[%s1120_s18 + $0x10] sm:$0xff]  ;;  %v352_v6 = vld [vmem:[%s1120_s18 + $0x28] sm:$0xff]  ;;  %v354_v7 = vld [vmem:[%s1120_s18 + $0x38] sm:$0xff]  ;;  %789 = vset.pattern.permute.xlu0 %v947_v8  ;;  %s380_s9 = scalar_lea.vmem %s1253_s2, %s645_s8  ;;  %s479_s7 = sshll.u32 %s1135_s5, 4  ;;  %s1188_s7 = int_to_ptr.vmem [resolvable:$true] %s479_s7 }
  0x52   : > { %v654_v9 = vpack.c.bf16 %v349_v5, %v347_v3  ;;  %v656_v10 = vpack.c.bf16 %v354_v7, %v352_v6  ;;  %v351_v11 = vld [vmem:[%s1120_s18 + $0x20] sm:$0xff]  ;;  %v353_v12 = vld [vmem:[%s1120_s18 + $0x30] sm:$0xff]  ;;  %v356_v13 = vld [vmem:[%s1120_s18 + $0x48] sm:$0xff]  ;;  %s464_s8 = scalar_lea.sflag [#allocation4], %s312_s20  ;;  %s820_s6 = scalar_lea.vmem %s1188_s7, 128 }
  0x53   : > { %653 = vmatprep.subr.bf16.mxu0 %v652_v4  ;;  %v358_v14 = vld [vmem:[%s1120_s18 + $0x58] sm:$0xff]  ;;  %v658_v15 = vpack.c.bf16 %v353_v12, %v351_v11  ;;  %v383_v17 = vld [vmem:[%s1251_s0 + $0x8] sm:$0xff]  ;;  %v381_v18 = vld [vmem:[%s380_s9] sm:$0xff]  ;;  %p821_p7 = scmp.ne.s32.totalorder %s1188_s7, %s820_s6  ;;  %p1269_p4 = scmp.ne.s32.totalorder %s1265_s11, 0 }
  0x54   : > { %655 = vmatpush1.bf16.xpose.msra.mxu0 %v654_v9  ;;  %v660_v16 = vpack.c.bf16 %v358_v14, %v356_v13  ;;  %448 = vmatprep.mubr.f32.mxu0 %v383_v17  ;;  %v355_v19 = vld [vmem:[%s1120_s18 + $0x40] sm:$0xff]  ;;  %v357_v20 = vld [vmem:[%s1120_s18 + $0x50] sm:$0xff]  ;;  %v360_v21 = vld [vmem:[%s1120_s18 + $0x68] sm:$0xff]  ;;  %s948_s22 = smov [#allocation5]  }
  0x55   : > { %657 = vmatprep.subr.bf16.mxu0 %v656_v10  ;;  %457 = vperm.xlu0 %789, %v381_v18   ;;  %v362_v22 = vld [vmem:[%s1120_s18 + $0x78] sm:$0xff]  ;;  %v662_v23 = vpack.c.bf16 %v357_v20, %v355_v19  ;;  %v359_v25 = vld [vmem:[%s1120_s18 + $0x60] sm:$0xff]  ;;  %v361_v26 = vld [vmem:[%s1120_s18 + $0x70] sm:$0xff]  ;;  %p822_p0 = pnand %p821_p7, %p1269_p4  ;;  %s824_s13 = sshll.u32 %s948_s22, 4  ;;  %s825_s13 = int_to_ptr.vmem [resolvable:$false] %s824_s13 }
  0x56   : > { %v664_v24 = vpack.c.bf16 %v362_v22, %v360_v21  ;;  %v364_v27 = vld [vmem:[%s1120_s18 + $0x88] sm:$0xff]  ;;  %v366_v28 = vld [vmem:[%s1120_s18 + $0x98] sm:$0xff]  ;;  %v666_v29 = vpack.c.bf16 %v361_v26, %v359_v25  ;;  %v363_v31 = vld [vmem:[%s1120_s18 + $0x80] sm:$0xff]  ;;  %s826_s9 = scalar_lea.vmem %s825_s13, 256  ;;  %p827_p5 = scmp.lt.s32.totalorder %s1188_s7, %s825_s13 }
  0x57   : > { %v668_v30 = vpack.c.bf16 %v366_v28, %v364_v27  ;;  %v365_v32 = vld [vmem:[%s1120_s18 + $0x90] sm:$0xff]  ;;  %v368_v33 = vld [vmem:[%s1120_s18 + $0xa8] sm:$0xff]  ;;  %v370_v34 = vld [vmem:[%s1120_s18 + $0xb8] sm:$0xff]  ;;  %p823_p1 = pneg %p822_p0  ;;  %p828_p6 = scmp.lt.s32.totalorder %s826_s9, %s820_s6 }
  0x58   : > { %v670_v35 = vpack.c.bf16 %v365_v32, %v363_v31  ;;  %v672_v36 = vpack.c.bf16 %v370_v34, %v368_v33  ;;  %v367_v37 = vld [vmem:[%s1120_s18 + $0xa0] sm:$0xff]  ;;  %v369_v38 = vld [vmem:[%s1120_s18 + $0xb0] sm:$0xff]  ;;  %v372_v39 = vld [vmem:[%s1120_s18 + $0xc8] sm:$0xff] }
  0x59   : > { %v374_v40 = vld [vmem:[%s1120_s18 + $0xd8] sm:$0xff]  ;;  %v674_v41 = vpack.c.bf16 %v369_v38, %v367_v37  ;;  %v371_v43 = vld [vmem:[%s1120_s18 + $0xc0] sm:$0xff]  ;;  %v373_v44 = vld [vmem:[%s1120_s18 + $0xd0] sm:$0xff]  ;;  %p829_p9 = por %p828_p6, %p827_p5 }
  0x5a   : > { %v676_v42 = vpack.c.bf16 %v374_v40, %v372_v39  ;;  %v376_v45 = vld [vmem:[%s1120_s18 + $0xe8] sm:$0xff]  ;;  %v378_v46 = vld [vmem:[%s1120_s18 + $0xf8] sm:$0xff]  ;;  %v678_v47 = vpack.c.bf16 %v373_v44, %v371_v43  ;;  %v375_v49 = vld [vmem:[%s1120_s18 + $0xe0] sm:$0xff] }
  0x5b   : > { %v680_v48 = vpack.c.bf16 %v378_v46, %v376_v45  ;;  %v377_v50 = vld [vmem:[%s1120_s18 + $0xf0] sm:$0xff]  ;;  %v382_v52 = vld [vmem:[%s1251_s0] sm:$0xff]  ;;  %s1186_s18 = scalar_lea.hbm %s1255_s4, %s647_s26  ;;  %p830_p10 = pnand %p829_p9, %p823_p1 }
  0x5c   : > { %659 = vmatpush1.bf16.xpose.msra.mxu0 %v658_v15  ;;  %v682_v51 = vpack.c.bf16 %v377_v50, %v375_v49  ;;  %v454_v55 = vld [vmem:[%s1135_s5] sm:$0xff] }
  0x5d   : > { %661 = vmatprep.subr.bf16.mxu0 %v660_v16 }
  0x64   : > { %663 = vmatpush1.bf16.xpose.msra.mxu0 %v662_v23 }
  0x65   : > { %665 = vmatprep.subr.bf16.mxu0 %v664_v24 }
  0x6c   : > { %667 = vmatpush1.bf16.xpose.msra.mxu0 %v666_v29 }
  0x6d   : > { %669 = vmatprep.subr.bf16.mxu0 %v668_v30 }
  0x74   : > { %671 = vmatpush1.bf16.xpose.msra.mxu0 %v670_v35 }
  0x75   : > { %673 = vmatprep.subr.bf16.mxu0 %v672_v36 }
  0x7c   : > { %675 = vmatpush1.bf16.xpose.msra.mxu0 %v674_v41 }
  0x7d   : > { %677 = vmatprep.subr.bf16.mxu0 %v676_v42 }
  0x84   : > { %679 = vmatpush1.bf16.xpose.msra.mxu0 %v678_v47 }
  0x85   : > { %681 = vmatprep.subr.bf16.mxu0 %v680_v48 }
  0x8c   : > { %683 = vmatpush1.bf16.xpose.msra.mxu0 %v682_v51 }
  0x93   : > { %449 = vmatmul.mubr.f32.vlgmr.msra.gmra.mrb[0].mxu0 %v382_v52 }
  0xd4   : > { %v458_v53 = vpop.permute.xlu0 %457 }
 0x166   : > { %v450_v54 = vpop.f32.mrb[0].mxu0 }
 0x167   : > { %v460_v56 = vmul.f32 %v458_v53, %v450_v54  ;;  %v452_v57 = vpop.f32.mrb[1].mxu0 }
 0x169   : > { %v461_v58 = vadd.f32 %v460_v56, %v454_v55 }
 0x16b   : > { %462 = vst [vmem:[%s1135_s5] sm:$0xff] %v461_v58 }
 0x16c   : > { %833 = shalt.err (!%p830_p10)
}
 0x16d   : > { %s834_s20 = scalar_lea.hbm %s1186_s18, 128  ;;  %s838_s29 = scalar_lea.hbm %s1255_s4, 256 }
 0x16e   : > { %p835_p11 = scmp.ne.s32.totalorder %s1186_s18, %s834_s20  ;;  %p839_p13 = scmp.lt.u32.totalorder %s1186_s18, %s1255_s4 }
 0x16f   : > { %p840_p12 = scmp.lt.u32.totalorder %s838_s29, %s834_s20  ;;  %p842_p7 = scmp.lt.u32.totalorder %s834_s20, %s1186_s18 }
 0x170   : > { %p836_p3 = pnand %p835_p11, %p1269_p4 }
 0x171   : > { %p841_p2 = por %p840_p12, %p839_p13 }
 0x172   : > { %p837_p8 = pneg %p836_p3 }
 0x173   : > { %p843_p0 = por %p842_p7, %p841_p2 }
 0x175   : > { %p844_p1 = pnand %p843_p0, %p837_p8 }
 0x177   : > { %847 = shalt.err (!%p844_p1)
}
 0x178   : > { %686 = dma.vmem_to_hbm [thread:$0]  (%p1269_p4), %s1188_s7, 128, %s1186_s18, %s464_s8  }
 0x179 PF: > { %p697_p5 = scmp.ge.s32.totalorder %s942_s25, 2  ;;  %s491_s26 = sand.u32 1, %s902_s15  }
 0x17a   : > { %p1270_p6 = scmp.ne.s32.totalorder %s1267_s14, 0  ;;  %s492_s27 = scalar_lea.sflag [#allocation4], %s491_s26 }
 0x17c   : > { %p693_p9 = pnand %p697_p5, %p1270_p6 }
 0x17e   : > { %897 = dma.done.wait (!%p693_p9), %s492_s27, 128  }
 0x17f   : > { %899 = vsyncadd (!%p693_p9), %s492_s27, 4294967168  ;;  %s20_s25 = sadd.s32 1, %s942_s25   ;;  %s1271_s11 = sld [smem:[#allocation8_spill]] }
 0x180   : > { %p17_p10 = scmp.ge.s32.totalorder %s20_s25, 10   ;;  %s1272_s20 = sld [smem:[#allocation11_spill]] }
 0x181   : > { %s1273_s7 = sld [smem:[#allocation9_spill]]  ;;  %s1274_s28 = sld [smem:[#allocation10_spill]] }
 0x182   : > { %s1275_s15 = smov %s906_s16  ;;  %s1276_s16 = smov %s910_s17 }
 0x183   : > { %s1277_s17 = smov %s1061_s12  ;;  %s1278_s18 = smov %s918_s19 }
 0x184   : > { %s1280_s21 = smov %s934_s23  ;;  %s1281_s22 = smov %s938_s24 }
 0x185   : > { %s1279_s19 = smov %s1271_s11  ;;  %19 = sbr.rel (!%p17_p10) target bundleno = 9 (0x9), region = 95 }
 0x187   : > { %s1282_s23 = smov %s1273_s7  ;;  %s1283_s24 = smov %s1274_s28 }
 0x18c   :  { %497 = vsyncpa [#allocation3], 1 }
 0x18d   :  { %499 = vsyncpa [#allocation3 + $0x1], 1 }
 0x18e   :  { %500 = vsyncpa [#allocation4], 1 }
 0x18f   :  { %502 = vsyncpa [#allocation4 + $0x1], 1 }

</bundles_post_ra>
